<compile_context>
chip_gen: v7x
topology: tpu7x:2x2x1
jax: 0.10.0
libtpu: 0.0.40
codegen_flags: <defaults>
</compile_context>

<pallas_src>
import functools

import jax
import jax.numpy as jnp
from jax.experimental import pallas as pl
from jax.experimental.pallas import tpu as pltpu


def _round_up(a, b):
    return (a + b - 1) // b * b


# ----------------------------- Pallas kernel --------------------------------
def _rgcn_kernel(*refs, has_bias):
    if has_bias:
        adj_ref, x_ref, w_ref, b_ref, o_ref = refs
    else:
        adj_ref, x_ref, w_ref, o_ref = refs
        b_ref = None

    r = pl.program_id(1)  # relation (reduction) axis — innermost

    @pl.when(r == 0)
    def _():
        o_ref[...] = jnp.zeros_like(o_ref)

    # xw_r = x @ W_r : tiny (N, D_out_pad) dot (contraction D_in), recomputed
    # per row tile — negligible vs. the adjacency matmul, keeps all compute
    # inside the kernel.
    xw = jnp.dot(x_ref[...], w_ref[...], preferred_element_type=jnp.float32)

    # out_tile += adj_r[row_tile] @ xw_r : bf16 MXU path with contraction depth
    # N and lane-dense (multiple-of-128) output width; f32 accumulation
    # directly into the revisited output block (no scratch).
    o_ref[...] += jnp.dot(adj_ref[...], xw.astype(jnp.bfloat16),
                          preferred_element_type=jnp.float32)

    if has_bias:
        @pl.when(r == pl.num_programs(1) - 1)
        def _():
            o_ref[...] += b_ref[...]  # broadcast (1, D_out_pad) over rows


# ------------------------------ host wrapper ---------------------------------
def rgcn_forward(x, adj, weight, bias=None, *, tile_rows=None):
    """x: (N, D_in), adj: (R, N, N) dense 0/1, weight: (R, D_in, D_out),
    bias: (D_out,) or None. Returns (N, D_out) float32."""
    R, N, N2 = adj.shape
    assert N == N2
    _, D_in, D_out = weight.shape
    assert x.shape == (N, D_in)

    # --- layout / dtype prep (wrapper glue) ----------------------------------
    # Row tile: multiple of 8 sublanes, capped at 512 so double-buffered adj
    # tiles stay well inside the default scoped-VMEM limit on v5e/v6e/v7x.
    if tile_rows is None:
        tile_rows = min(512, _round_up(N, 8))
    tm = _round_up(min(tile_rows, _round_up(N, 8)), 8)
    n_pad = _round_up(N, tm)
    d_out_pad = _round_up(D_out, 128)  # lane-dense output stores

    adj_b = adj.astype(jnp.bfloat16)   # 0/1 is exact in bf16
    if n_pad != N:
        adj_b = jnp.pad(adj_b, ((0, 0), (0, n_pad - N), (0, 0)))
    x_b = x.astype(jnp.bfloat16)
    w_b = weight.astype(jnp.bfloat16)
    if d_out_pad != D_out:
        w_b = jnp.pad(w_b, ((0, 0), (0, 0), (0, d_out_pad - D_out)))

    in_specs = [
        # adjacency: relation dim squeezed, rows tiled, full column extent.
        pl.BlockSpec((None, tm, N), lambda i, r: (r, i, 0)),
        # node features: single block, stays resident in VMEM (index never changes).
        pl.BlockSpec((N, D_in), lambda i, r: (0, 0)),
        # per-relation weight slice.
        pl.BlockSpec((None, D_in, d_out_pad), lambda i, r: (r, 0, 0)),
    ]
    args = [adj_b, x_b, w_b]
    has_bias = bias is not None
    if has_bias:
        b = bias.astype(jnp.float32)
        if d_out_pad != D_out:
            b = jnp.pad(b, (0, d_out_pad - D_out))
        in_specs.append(pl.BlockSpec((1, d_out_pad), lambda i, r: (0, 0)))
        args.append(b.reshape(1, d_out_pad))

    out = pl.pallas_call(
        functools.partial(_rgcn_kernel, has_bias=has_bias),
        out_shape=jax.ShapeDtypeStruct((n_pad, d_out_pad), jnp.float32),
        grid_spec=pltpu.PrefetchScalarGridSpec(
            num_scalar_prefetch=0,
            grid=(n_pad // tm, R),
            in_specs=in_specs,
            out_specs=pl.BlockSpec((tm, d_out_pad), lambda i, r: (i, 0)),
        ),
        compiler_params=pltpu.CompilerParams(
            # row tiles are independent (megacore-parallel on v7x);
            # relation axis is the reduction -> trailing "arbitrary".
            dimension_semantics=("parallel", "arbitrary"),
        ),
    )(*args)

    return out[:N, :D_out]


# --------------------------- parameter init (glue) ---------------------------
def xavier_uniform(key, shape):
    # torch.nn.init.xavier_uniform_: fan_in = shape[1]*prod(shape[2:]),
    # fan_out = shape[0]*prod(shape[2:])
    receptive = 1
    for s in shape[2:]:
        receptive *= s
    fan_in = shape[1] * receptive
    fan_out = shape[0] * receptive
    bound = (6.0 / (fan_in + fan_out)) ** 0.5
    return jax.random.uniform(key, shape, jnp.float32, -bound, bound)


class RGCNParams:
    def __init__(self, key, input_dim, output_dim, num_bases, num_rel, bias=False):
        self.num_bases = num_bases
        self.num_rel = num_rel
        k1, k2, k3 = jax.random.split(key, 3)
        if num_bases > 0:
            self.w_bases = xavier_uniform(k1, (num_bases, input_dim, output_dim))
            self.w_rel = xavier_uniform(k2, (num_rel, num_bases))
        else:
            self.weight = xavier_uniform(k3, (num_rel, input_dim, output_dim))
        self.bias = jnp.zeros((output_dim,), jnp.float32) if bias else None

    def combined_weight(self):
        if self.num_bases > 0:
            # basis recombination (tiny; plain-JAX glue)
            return jnp.einsum("rb,bio->rio", self.w_rel, self.w_bases)
        return self.weight

    def forward(self, x, adj, tile_rows=None):
        return rgcn_forward(x, adj, self.combined_weight(), self.bias,
                            tile_rows=tile_rows)


# ------------------------------------ main -----------------------------------
if __name__ == "__main__":
    key = jax.random.PRNGKey(0)
    N, D_in, D_out = 48, 8, 32
    num_rel, num_bases = 3, 2

    kp, kx, ka = jax.random.split(key, 3)
    params = RGCNParams(kp, D_in, D_out, num_bases, num_rel, bias=False)

    x = jax.random.normal(kx, (N, D_in), jnp.float32)
    # synthetic sparse-ish adjacency, stored dense (see TODO above)
    adj = (jax.random.uniform(ka, (num_rel, N, N)) < 0.2).astype(jnp.float32)

    # small tile_rows so the demo exercises the multi-row-tile "parallel" axis
    out = params.forward(x, adj, tile_rows=16)
    jax.block_until_ready(out)

    # reference: exact torch forward semantics in plain JAX, using the same
    # bf16-rounded x/weight the kernel consumes (f32 math throughout).
    weight = params.combined_weight()
    x_b = x.astype(jnp.bfloat16).astype(jnp.float32)
    w_b = weight.astype(jnp.bfloat16).astype(jnp.float32)
    supports = [adj[r] @ x_b for r in range(num_rel)]
    tmp = jnp.concatenate(supports, axis=1)
    ref = tmp @ w_b.reshape(num_rel * D_in, D_out)

    assert out.shape == (N, D_out)
    assert jnp.allclose(out, ref, atol=3e-2, rtol=3e-2), \
        float(jnp.max(jnp.abs(out - ref)))

    print("KERNEL_OK")
</pallas_src>

<mosaic_0001>
module attributes {stable_mosaic.version = 11 : i64} {
  func.func @_rgcn_kernel(%arg0: i32, %arg1: i32, %arg2: memref<1x16x48xbf16, #tpu.memory_space<vmem>>, %arg3: memref<48x8xbf16, #tpu.memory_space<vmem>>, %arg4: memref<1x8x128xbf16, #tpu.memory_space<vmem>>, %arg5: memref<16x128xf32, #tpu.memory_space<vmem>>) attributes {dimension_semantics = [#tpu.dimension_semantics<parallel>, #tpu.dimension_semantics<arbitrary>], iteration_bounds = array<i64: 3, 3>, scalar_prefetch = 0 : i64, scratch_operands = 0 : i64, tpu.core_type = #tpu.core_type<tc>, window_params = [{transform_indices = @transform_0, window_bounds = array<i64: 1, 16, 48>}, {pipeline_mode = #tpu.pipeline_mode<synchronous>, transform_indices = @transform_1, window_bounds = array<i64: 48, 8>}, {transform_indices = @transform_2, window_bounds = array<i64: 1, 8, 128>}, {transform_indices = @transform_3, window_bounds = array<i64: 16, 128>}]} {
    %c0_i32 = arith.constant 0 : i32
    %0 = arith.cmpi eq, %arg1, %c0_i32 : i32
    %1 = arith.extui %0 : i1 to i32
    %c0_i32_0 = arith.constant 0 : i32
    %2 = arith.cmpi ne, %1, %c0_i32_0 : i32
    scf.if %2 {
      %cst_13 = arith.constant 0.000000e+00 : f32
      %14 = vector.broadcast %cst_13 : f32 to vector<16x128xf32>
      %c0_14 = arith.constant 0 : index
      %c0_15 = arith.constant 0 : index
      %15 = vector.load %arg5[%c0_14, %c0_15] : memref<16x128xf32, #tpu.memory_space<vmem>>, vector<16x128xf32>
      tpu.vector_store %arg5[%c0_14, %c0_15], %14 {strides = array<i32>} : memref<16x128xf32, #tpu.memory_space<vmem>>, vector<16x128xf32>,
    } else {
    }
    %c0 = arith.constant 0 : index
    %c0_1 = arith.constant 0 : index
    %3 = vector.load %arg3[%c0, %c0_1] : memref<48x8xbf16, #tpu.memory_space<vmem>>, vector<48x8xbf16>
    %c0_2 = arith.constant 0 : index
    %c0_3 = arith.constant 0 : index
    %c0_4 = arith.constant 0 : index
    %4 = vector.load %arg4[%c0_2, %c0_3, %c0_4] : memref<1x8x128xbf16, #tpu.memory_space<vmem>>, vector<1x8x128xbf16>
    %5 = vector.shape_cast %4 : vector<1x8x128xbf16> to vector<8x128xbf16>
    %cst = arith.constant dense<0.000000e+00> : vector<48x128xf32>
    %6 = tpu.matmul %3, %5, %cst {dimension_numbers = #tpu.dot_dimension_numbers<[1], [0], [0], [1], [0, 0, 1, 1], [], []>} : vector<48x8xbf16>, vector<8x128xbf16>, vector<48x128xf32> -> vector<48x128xf32>
    %c0_5 = arith.constant 0 : index
    %c0_6 = arith.constant 0 : index
    %7 = vector.load %arg5[%c0_5, %c0_6] : memref<16x128xf32, #tpu.memory_space<vmem>>, vector<16x128xf32>
    %c0_7 = arith.constant 0 : index
    %c0_8 = arith.constant 0 : index
    %c0_9 = arith.constant 0 : index
    %8 = vector.load %arg2[%c0_7, %c0_8, %c0_9] : memref<1x16x48xbf16, #tpu.memory_space<vmem>>, vector<1x16x48xbf16>
    %9 = vector.shape_cast %8 : vector<1x16x48xbf16> to vector<16x48xbf16>
    %10 = arith.truncf %6 : vector<48x128xf32> to vector<48x128xbf16>
    %cst_10 = arith.constant dense<0.000000e+00> : vector<16x128xf32>
    %11 = tpu.matmul %9, %10, %cst_10 {dimension_numbers = #tpu.dot_dimension_numbers<[1], [0], [0], [1], [0, 0, 1, 1], [], []>} : vector<16x48xbf16>, vector<48x128xbf16>, vector<16x128xf32> -> vector<16x128xf32>
    %12 = arith.addf %7, %11 : vector<16x128xf32>
    %c0_11 = arith.constant 0 : index
    %c0_12 = arith.constant 0 : index
    %13 = vector.load %arg5[%c0_11, %c0_12] : memref<16x128xf32, #tpu.memory_space<vmem>>, vector<16x128xf32>
    tpu.vector_store %arg5[%c0_11, %c0_12], %12 {strides = array<i32>} : memref<16x128xf32, #tpu.memory_space<vmem>>, vector<16x128xf32>,
    return
  }
  func.func @transform_0(%arg0: i32, %arg1: i32) -> (i32, i32, i32) {
    %c0_i32 = arith.constant 0 : i32
    %c0_i32_0 = arith.constant 0 : i32
    return %arg1, %arg0, %c0_i32 : i32, i32, i32
  }
  func.func @transform_1(%arg0: i32, %arg1: i32) -> (i32, i32) {
    %c0_i32 = arith.constant 0 : i32
    %c0_i32_0 = arith.constant 0 : i32
    %c0_i32_1 = arith.constant 0 : i32
    return %c0_i32, %c0_i32_0 : i32, i32
  }
  func.func @transform_2(%arg0: i32, %arg1: i32) -> (i32, i32, i32) {
    %c0_i32 = arith.constant 0 : i32
    %c0_i32_0 = arith.constant 0 : i32
    %c0_i32_1 = arith.constant 0 : i32
    return %arg1, %c0_i32, %c0_i32_0 : i32, i32, i32
  }
  func.func @transform_3(%arg0: i32, %arg1: i32) -> (i32, i32) {
    %c0_i32 = arith.constant 0 : i32
    %c0_i32_0 = arith.constant 0 : i32
    return %arg0, %c0_i32 : i32, i32
  }
}

</mosaic_0001>

<bundles_post_ra>
// kernel: tpu_custom_call.1
= control target key start
LH: loop header
LB: loop body
LE: loop exit
PB: predicated region body
PF: predicated region fallthrough
CT: control target
= control target key end

     0   :  { %8 = vsyncpa [#allocation3], 0  ;;  %s1106_s0 = inlined_call_operand.hbm [shape: bf16[3,48,48], index: 0, kind: input, shape index: {}]   ;;  %s1107_s1 = inlined_call_operand.vmem [shape: bf16[48,8], index: 1, kind: input, shape index: {}]   ;;  %s1108_s2 = inlined_call_operand.vmem [shape: bf16[3,8,128], index: 2, kind: input, shape index: {}]   ;;  %s1109_s3 = inlined_call_operand.hbm [shape: f32[48,128], index: 3, kind: output, shape index: {}]  }
   0x1   :  { %10 = vsyncpa [#allocation3 + $0x1], 0 }
   0x2   :  { %11 = vsyncpa [#allocation4], 0 }
   0x3   :  { %13 = vsyncpa [#allocation4 + $0x1], 0  ;;  %s853_s12 = smov 0   ;;  %s855_s13 = smov 0  }
   0x4   :  { %s857_s14 = smov 0   ;;  %s859_s15 = smov 0  }
   0x5   :  { %s861_s16 = smov 0   ;;  %s863_s17 = smov 0  }
   0x6   :  { %s865_s18 = smov 0   ;;  %s867_s19 = smov 0  }
   0x7   :  { %s869_s20 = smov 0   ;;  %s871_s21 = smov 0  }
   0x8   :  { %s873_s22 = smov 0  }
   0x9 LB: > { %s498_s23 = sadd.s32 4294967295, %s822_s22   ;;  %s499_s24 = sadd.s32 4294967294, %s822_s22   ;;  %s822_s22 = sphi %s873_s22, %s19_s22   ;;  %s818_s21 = sphi %s871_s21, %s1135_s21   ;;  %s814_s20 = sphi %s869_s20, %s1134_s20   ;;  %s810_s19 = sphi %s867_s19, %s1133_s19   ;;  %s806_s18 = sphi %s865_s18, %s1132_s18   ;;  %s802_s17 = sphi %s863_s17, %s1131_s17   ;;  %s798_s16 = sphi %s861_s16, %s1130_s16   ;;  %s794_s15 = sphi %s859_s15, %s1129_s15   ;;  %s790_s14 = sphi %s857_s14, %s1128_s14   ;;  %s786_s13 = sphi %s855_s13, %s1127_s13   ;;  %s782_s12 = sphi %s853_s12, %s1126_s12  }
   0xa   : > { %s28_s25 = sadd.s32 1, %s814_s20  ;;  %s31_s26 = sadd.s32 1, %s818_s21 }
   0xb   : > { %p29_p0 = scmp.ge.s32.totalorder %s28_s25, 3  ;;  %s40_s27 = sadd.s32 1, %s802_s17 }
   0xc   : > { %p47_p1 = scmp.ne.s32.totalorder %s802_s17, %s798_s16  ;;  %p48_p2 = scmp.eq.s32.totalorder %s822_s22, 0 }
   0xd   : > { %s1137_s25 = smov (%p29_p0, %s28_s25), 0  ;;  %s1139_s26 = smov (!%p29_p0, %s31_s26), %s818_s21 }
   0xe   : > { %1113 = sst [smem:[#allocation8_spill]] %s1137_s25  ;;  %s35_s28 = ssub.s32 %s814_s20, %s1137_s25 }
   0xf   : > { %p919_p3 = por %p48_p2, %p47_p1  ;;  %p33_p4 = scmp.ge.s32.totalorder %s1139_s26, 3 }
  0x10   : > { %p53_p5 = scmp.ne.s32.totalorder %s798_s16, %s794_s15  ;;  %p54_p6 = scmp.eq.s32.totalorder %s498_s23, 0 }
  0x11   : > { %s113_s30 = sadd.s32 1, %s790_s14  ;;  %s1141_s26 = smov (%p33_p4, %s1139_s26), 0 }
  0x12   : > { %1115 = sst [smem:[#allocation9_spill]] %s1141_s26  ;;  %p927_p7 = por %p54_p6, %p53_p5 }
  0x13   : > { %p123_p8 = scmp.ne.s32.totalorder %s790_s14, %s786_s13  ;;  %s36_s5 = ssub.s32 %s818_s21, %s1141_s26 }
  0x14   : > { %p124_p9 = scmp.eq.s32.totalorder %s498_s23, 8  ;;  %s37_s6 = sor.u32 %s36_s5, %s35_s28 }
  0x15   : > { %p111_p10 = scmp.eq.s32.totalorder %s36_s5, 0  ;;  %p38_p11 = scmp.eq.s32.totalorder %s37_s6, 0 }
  0x16   : > { %p935_p12 = por %p124_p9, %p123_p8  ;;  %p129_p13 = scmp.ne.s32.totalorder %s786_s13, %s782_s12 }
  0x17   : > { %s940_s8 = scalar_select %p111_p10, %s790_s14, %s113_s30  }
  0x18   : > { %s1117_s7 = scalar_select %p935_p12, 1, 0 }
  0x19   : > { %s943_s9 = scalar_select %p38_p11, %s802_s17, %s40_s27  }
  0x1a   : > { %p130_p0 = scmp.eq.s32.totalorder %s499_s24, 8  ;;  %p569_p1 = scmp.lt.s32.totalorder %s822_s22, 9 }
  0x1b   : > { %1118 = sst [smem:[#allocation10_spill]] %s943_s9  ;;  %s153_s11 = sand.u32 1, %s802_s17  }
  0x1c   : > { %p948_p2 = por %p130_p0, %p129_p13  ;;  %s502_s15 = sshll.u32 %s153_s11, 3 }
  0x1d   : > { %s503_s23 = sshll.u32 %s818_s21, 1  ;;  %s556_s28 = smul.u32 6, %s814_s20 }
  0x1e   : > { %s1119_s10 = scalar_select %p948_p2, 1, 0 }
  0x1f   : > { %s157_s5 = scalar_lea.vmem [#allocation2], %s502_s15  ;;  %p959_p4 = pnand %p569_p1, %p919_p3 }
  0x20   : > { %s166_s6 = sshll.u32 %s157_s5, 4  ;;  %s163_s24 = sadd.s32 %s556_s28, %s503_s23  ;;  %s955_s6 = int_to_ptr.vmem [resolvable:$true] %s166_s6 }
  0x21   : > { %s504_s27 = sshll.u32 %s163_s24, 6  ;;  %s968_s15 = scalar_lea.sflag [#allocation3], %s153_s11 }
  0x22   : > { %s966_s9 = scalar_lea.hbm %s1106_s0, %s504_s27  ;;  %p672_p5 = pneg %p959_p4 }
  0x23   : > { %s670_s29 = scalar_lea.hbm %s966_s9, 128  ;;  %s675_s25 = scalar_lea.hbm %s1106_s0, 1152 }
  0x24   : > { %p671_p3 = scmp.ne.s32.totalorder %s966_s9, %s670_s29  ;;  %p676_p9 = scmp.lt.u32.totalorder %s966_s9, %s1106_s0 }
  0x25   : > { %p677_p10 = scmp.lt.u32.totalorder %s675_s25, %s670_s29  ;;  %p679_p13 = scmp.lt.u32.totalorder %s670_s29, %s966_s9 }
  0x26   : > { %p673_p6 = pnand %p672_p5, %p671_p3 }
  0x27   : > { %p678_p11 = por %p677_p10, %p676_p9 }
  0x28   : > { %p674_p8 = pneg %p673_p6 }
  0x29   : > { %p680_p0 = por %p679_p13, %p678_p11 }
  0x2b   : > { %p681_p1 = pnand %p680_p0, %p674_p8 }
  0x2d   : > { %684 = shalt.err (!%p681_p1)
}
  0x2e   : > { %s685_s11 = scalar_lea.vmem %s955_s6, 128  ;;  %s824_s24 = smov [#allocation2]  }
  0x2f   : > { %p686_p3 = scmp.ne.s32.totalorder %s955_s6, %s685_s11  ;;  %s690_s27 = sshll.u32 %s824_s24, 4  ;;  %s691_s27 = int_to_ptr.vmem [resolvable:$false] %s690_s27 }
  0x30   : > { %s692_s23 = scalar_lea.vmem %s691_s27, 256  ;;  %p693_p12 = scmp.lt.s32.totalorder %s955_s6, %s691_s27 }
  0x31   : > { %p688_p6 = pnand %p686_p3, %p672_p5  ;;  %p694_p9 = scmp.lt.s32.totalorder %s692_s23, %s685_s11 }
  0x33   : > { %p689_p2 = pneg %p688_p6  ;;  %p695_p10 = por %p694_p9, %p693_p12 }
  0x35   : > { %p696_p11 = pnand %p695_p10, %p689_p2 }
  0x37   : > { %699 = shalt.err (!%p696_p11)
}
  0x38   : > { %s825_s29 = smov 64   ;;  %s826_s28 = smov 4  }
  0x39   : > { %564 = dma.hbm_to_vmem [thread:$0]  (!%p959_p4), %s966_s9, 128, %s955_s6, %s968_s15, %s825_s29, %s825_s29, %s826_s28  }
  0x3a   : > { %p505_p5 = scmp.ge.s32.totalorder %s822_s22, 1  ;;  %p181_p8 = scmp.lt.s32.totalorder %s822_s22, 10 }
  0x3c   : > { %p182_p13 = pnand %p505_p5, %p181_p8 }
  0x3d   : > { %s187_s25 = sand.u32 (!%p182_p13), 1, %s798_s16  }
  0x3e   : > { %185 = sbr.rel (%p182_p13) target bundleno = 551 (0x227), region = 32  ;;  %s999_s26 = sshll.u32 (!%p182_p13), %s187_s25, 3 }
  0x3f   : > { %s188_s5 = scalar_lea.sflag (!%p182_p13), [#allocation3], %s187_s25  ;;  %s191_s11 = scalar_lea.vmem (!%p182_p13), [#allocation2], %s999_s26 }
  0x45   : > { %773 = dma.done.wait (%p927_p7), %s188_s5, 128  }
  0x46   : > { %775 = vsyncadd (%p927_p7), %s188_s5, 4294967168  ;;  %s215_s9 = sand.u32 1, %s786_s13   ;;  %p219_p12 = scmp.lt.s32.totalorder %s806_s18, 2 }
  0x47   : > { %s507_s6 = sshll.u32 %s215_s9, 4  ;;  %p509_p2 = scmp.ne.s32.totalorder %s806_s18, 0 }
  0x48   : > { %s220_s30 = scalar_select %p219_p12, %s806_s18, 2 }
  0x49   : > { %s1014_s29 = scalar_lea.vmem [#allocation5], %s507_s6  ;;  %228 = sbr.rel (%p509_p2) target bundleno = 80 (0x50), region = 40  ;;  %v827_v0 = vmov (!%p509_p2), 0.0  }
  0x4a   : > { %s508_s15 = sshll.u32 %s220_s30, 2  ;;  %229 = vst [vmem:[%s1014_s29] sm:$0xff] (!%p509_p2), %v827_v0  ;;  %230 = vst [vmem:[%s1014_s29 + $0x8] sm:$0xff] (!%p509_p2), %v827_v0 }
  0x4b   : > { %s222_s23 = scalar_lea.vmem %s1108_s2, %s508_s15 }
  0x50 PF: > { %v237_v1 = vld [vmem:[%s222_s23] sm:$0xf]  ;;  %vm263_vm0 = vcmask 1043456   ;;  %v828_v2 = vmov 0.0   ;;  %vm829_vm1 = vmmov 0   ;;  %vm253_vm2 = vcmask 64512  }
  0x51   : > { %532 = vmatprep.subr.bf16.mxu0 %v828_v2  ;;  %v265_v3 = vsel %vm263_vm0, %v237_v1, 0  ;;  %534 = vmatprep.mubr.msk.bf16.mxu0 %vm829_vm1, %v828_v2  ;;  %v666_v4 = vld [vmem:[%s1107_s1] sm:$0xff]   ;;  %v667_v5 = vld [vmem:[%s1107_s1 + $0x8] sm:$0xff]   ;;  %v668_v6 = vld [vmem:[%s1107_s1 + $0x10] sm:$0xff]   ;;  %vm336_vm3 = vcmask 392192   ;;  %s523_s30 = sshll.u32 %s810_s19, 8 }
  0x52   : > { %533 = vmatpush3.bf16.msra.mxu0 %v265_v3  ;;  %546 = vmatprep.subr.bf16.mxu1 %v828_v2  ;;  %v669_v22 = vld [vmem:[%s191_s11] sm:$0xff]   ;;  %v324_v23 = vld [vmem:[%s1014_s29] sm:$0xff]  ;;  %s399_s15 = sshll.u32 %s1014_s29, 4  ;;  %s1037_s23 = scalar_lea.hbm %s1109_s3, %s523_s30  ;;  %s1039_s15 = int_to_ptr.vmem [resolvable:$true] %s399_s15 }
  0x53   : > { %552 = vmatprep.mubr.msk.bf16.mxu1 %vm829_vm1, %v828_v2  ;;  %v325_v25 = vld [vmem:[%s1014_s29 + $0x8] sm:$0xff]  ;;  %s1045_s19 = scalar_lea.sflag [#allocation4], %s215_s9  ;;  %s700_s26 = scalar_lea.vmem %s1039_s15, 256 }
  0x54   : > { %p701_p7 = scmp.ne.s32.totalorder %s1039_s15, %s700_s26  ;;  %p1121_p4 = scmp.ne.s32.totalorder %s1117_s7, 0 }
  0x55   : > { %535 = vmatmul.mubr.msk.bf16.vlgmr.msra.gmra.mrb[0].mxu0 %vm253_vm2, %v666_v4  ;;  %s830_s11 = smov [#allocation5]  }
  0x56   : > { %538 = vmatprep.mubr.msk.bf16.mxu0 %vm829_vm1, %v828_v2  ;;  %p702_p0 = pnand %p701_p7, %p1121_p4  ;;  %s704_s4 = sshll.u32 %s830_s11, 4  ;;  %s705_s4 = int_to_ptr.vmem [resolvable:$false] %s704_s4 }
  0x57   : > { %s706_s28 = scalar_lea.vmem %s705_s4, 512  ;;  %p707_p3 = scmp.lt.s32.totalorder %s1039_s15, %s705_s4 }
  0x58   : > { %p703_p1 = pneg %p702_p0  ;;  %p708_p6 = scmp.lt.s32.totalorder %s706_s28, %s700_s26 }
  0x5a   : > { %p709_p9 = por %p708_p6, %p707_p3 }
  0x5c   : > { %p710_p10 = pnand %p709_p9, %p703_p1 }
  0x5d   : > { %539 = vmatmul.mubr.msk.bf16.gmra.mrb[4].mxu0 %vm253_vm2, %v667_v5 }
  0x5e   : > { %542 = vmatprep.mubr.msk.bf16.mxu0 %vm829_vm1, %v828_v2 }
  0x65   : > { %543 = vmatmul.mubr.msk.bf16.gmra.mrb[8].mxu0 %vm253_vm2, %v668_v6 }
 0x128   : > { %v301_v7 = vpop.f32.mrb[0].mxu0 }
 0x129   : > { %v536_v8 = vpop.f32.mrb[1].mxu0 }
 0x12a   : > { %v304_v9 = vpop.f32.mrb[2].mxu0 }
 0x12b   : > { %v328_v10 = vpack.c.bf16 %v304_v9, %v301_v7  ;;  %v537_v11 = vpop.f32.mrb[3].mxu0 }
 0x12d   : > { %547 = vmatpush3.bf16.msra.mxu1 %v328_v10 }
 0x12e   : > { %548 = vmatprep.subr.bf16.mxu1 %v828_v2 }
 0x130   : > { %v309_v12 = vpop.f32.mrb[4].mxu0 }
 0x131   : > { %v540_v13 = vpop.f32.mrb[5].mxu0 }
 0x132   : > { %v312_v14 = vpop.f32.mrb[6].mxu0 }
 0x133   : > { %v329_v15 = vpack.c.bf16 %v312_v14, %v309_v12  ;;  %v541_v16 = vpop.f32.mrb[7].mxu0 }
 0x135   : > { %549 = vmatpush3.bf16.msra.mxu1 %v329_v15 }
 0x136   : > { %550 = vmatprep.subr.bf16.mxu1 %v828_v2 }
 0x138   : > { %v317_v17 = vpop.f32.mrb[8].mxu0 }
 0x139   : > { %v544_v18 = vpop.f32.mrb[9].mxu0 }
 0x13a   : > { %v320_v19 = vpop.f32.mrb[10].mxu0 }
 0x13b   : > { %v330_v20 = vpack.c.bf16 %v320_v19, %v317_v17  ;;  %v545_v21 = vpop.f32.mrb[11].mxu0 }
 0x13d   : > { %551 = vmatpush3.bf16.msra.mxu1 %v330_v20 }
 0x140   : > { %553 = vmatmul.mubr.msk.bf16.vlgmr.msra.gmra.mrb[0].mxu1 %vm336_vm3, %v669_v22 }
 0x213   : > { %v374_v24 = vpop.f32.mrb[0].mxu1 }
 0x214   : > { %v381_v26 = vadd.f32 %v374_v24, %v324_v23  ;;  %v554_v27 = vpop.f32.mrb[1].mxu1 }
 0x215   : > { %v377_v28 = vpop.f32.mrb[2].mxu1 }
 0x216   : > { %383 = vst [vmem:[%s1014_s29] sm:$0xff] %v381_v26  ;;  %v382_v29 = vadd.f32 %v377_v28, %v325_v25  ;;  %v555_v30 = vpop.f32.mrb[3].mxu1 }
 0x218   : > { %384 = vst [vmem:[%s1014_s29 + $0x8] sm:$0xff] %v382_v29 }
 0x219   : > { %713 = shalt.err (!%p710_p10)
}
 0x21a   : > { %s714_s9 = scalar_lea.hbm %s1037_s23, 256  ;;  %s718_s25 = scalar_lea.hbm %s1109_s3, 768 }
 0x21b   : > { %p715_p11 = scmp.ne.s32.totalorder %s1037_s23, %s714_s9  ;;  %p719_p13 = scmp.lt.u32.totalorder %s1037_s23, %s1109_s3 }
 0x21c   : > { %p720_p12 = scmp.lt.u32.totalorder %s718_s25, %s714_s9  ;;  %p722_p7 = scmp.lt.u32.totalorder %s714_s9, %s1037_s23 }
 0x21d   : > { %p716_p5 = pnand %p715_p11, %p1121_p4 }
 0x21e   : > { %p721_p2 = por %p720_p12, %p719_p13 }
 0x21f   : > { %p717_p8 = pneg %p716_p5 }
 0x220   : > { %p723_p0 = por %p722_p7, %p721_p2 }
 0x222   : > { %p724_p1 = pnand %p723_p0, %p717_p8 }
 0x224   : > { %727 = shalt.err (!%p724_p1)
}
 0x225   : > { %s831_s30 = smov 128   ;;  %s832_s24 = smov 8  }
 0x226   : > { %559 = dma.vmem_to_hbm [thread:$0]  (%p1121_p4), %s1039_s15, 256, %s1037_s23, %s1045_s19, %s831_s30, %s831_s30, %s832_s24  }
 0x227 PF: > { %p570_p3 = scmp.ge.s32.totalorder %s822_s22, 2  ;;  %s414_s27 = sand.u32 1, %s782_s12  }
 0x228   : > { %p1122_p6 = scmp.ne.s32.totalorder %s1119_s10, 0  ;;  %s415_s26 = scalar_lea.sflag [#allocation4], %s414_s27 }
 0x22a   : > { %p566_p9 = pnand %p570_p3, %p1122_p6 }
 0x22c   : > { %777 = dma.done.wait (!%p566_p9), %s415_s26, 256  }
 0x22d   : > { %779 = vsyncadd (!%p566_p9), %s415_s26, 4294967040  ;;  %s19_s22 = sadd.s32 1, %s822_s22   ;;  %s1123_s7 = sld [smem:[#allocation10_spill]] }
 0x22e   : > { %p16_p10 = scmp.ge.s32.totalorder %s19_s22, 11   ;;  %s1124_s23 = sld [smem:[#allocation8_spill]] }
 0x22f   : > { %s1125_s11 = sld [smem:[#allocation9_spill]]  ;;  %s1126_s12 = smov %s786_s13 }
 0x230   : > { %s1127_s13 = smov %s790_s14  ;;  %s1128_s14 = smov %s940_s8 }
 0x231   : > { %s1129_s15 = smov %s798_s16  ;;  %s1130_s16 = smov %s802_s17 }
 0x232   : > { %s1132_s18 = smov %s814_s20  ;;  %s1133_s19 = smov %s818_s21 }
 0x233   : > { %s1131_s17 = smov %s1123_s7  ;;  %18 = sbr.rel (!%p16_p10) target bundleno = 9 (0x9), region = 84 }
 0x234   : > { %s1134_s20 = smov %s1124_s23 }
 0x235   : > { %s1135_s21 = smov %s1125_s11 }
 0x23a   :  { %420 = vsyncpa [#allocation3], 1 }
 0x23b   :  { %422 = vsyncpa [#allocation3 + $0x1], 1 }
 0x23c   :  { %423 = vsyncpa [#allocation4], 1 }
 0x23d   :  { %425 = vsyncpa [#allocation4 + $0x1], 1 }

</bundles_post_ra>
